<compile_context>
chip_gen: v5e
topology: v5e:2x2
jax: 0.10.0
libtpu: 0.0.40
codegen_flags: <defaults>
</compile_context>

<pallas_src>
import functools
import math

import numpy as np
import jax
import jax.numpy as jnp
from jax.experimental import pallas as pl
from jax.experimental.pallas import tpu as pltpu

# ----------------------------- config (small, consistent with the module) ----
B, S = 2, 8
HIDDEN = 32
NUM_HEADS = 4
NUM_KV_HEADS = 2
HEAD_DIM = HIDDEN // NUM_HEADS          # 8
NUM_KV_GROUPS = NUM_HEADS // NUM_KV_HEADS
ROPE_THETA = 10000.0
SPARSITY = 0.5                          # TernaryLinear sparsity
ATTENTION_DROPOUT = 0.0                 # no-op in eval / p=0
# attention_bias = False -> no biases on q/k/v/o projections.


# ----------------------------- fused Pallas kernel ---------------------------
def _fused_attn_kernel(x_ref, wq_ref, wk_ref, wv_ref, wo_ref,
                       cos_ref, sin_ref, bias_ref, o_ref, *, scale):
    """One batch element: projections + RoPE + causal attention + o-proj.

    x_ref   : (1, S, HIDDEN)
    wq_ref  : (H,   2, HIDDEN, D)   [..., 0, :, :] = Wq_h^T, [..., 1, :, :] = Wq_h^T @ R
    wk_ref  : (Hkv, 2, HIDDEN, D)
    wv_ref  : (Hkv, HIDDEN, D)
    wo_ref  : (H, D, HIDDEN)        per-head slice of Wo^T
    cos_ref / sin_ref : (S, D)
    bias_ref: (S, S) additive causal mask (0 / finfo.min)
    o_ref   : (1, S, HIDDEN)
    """
    x = x_ref[0]                 # (S, HIDDEN)
    cos = cos_ref[...]           # (S, D)
    sin = sin_ref[...]           # (S, D)
    bias = bias_ref[...]         # (S, S)

    # RoPE'd K and V per kv head, computed once and shared by the GQA group
    # (repeat_kv realized by index reuse — no data duplication).
    ks, vs = [], []
    for kh in range(NUM_KV_HEADS):
        k_main = jnp.dot(x, wk_ref[kh, 0], preferred_element_type=jnp.float32)
        k_rot = jnp.dot(x, wk_ref[kh, 1], preferred_element_type=jnp.float32)
        ks.append(k_main * cos + k_rot * sin)            # apply_rotary_pos_emb(k)
        vs.append(jnp.dot(x, wv_ref[kh], preferred_element_type=jnp.float32))

    acc = jnp.zeros((x.shape[0], wo_ref.shape[-1]), jnp.float32)   # (S, HIDDEN)
    for h in range(NUM_HEADS):
        # q projection + RoPE (rotate_half folded into the constant weight).
        q_main = jnp.dot(x, wq_ref[h, 0], preferred_element_type=jnp.float32)
        q_rot = jnp.dot(x, wq_ref[h, 1], preferred_element_type=jnp.float32)
        q = q_main * cos + q_rot * sin                   # (S, D)

        k = ks[h // NUM_KV_GROUPS]
        v = vs[h // NUM_KV_GROUPS]

        # attn_weights = q @ k^T / sqrt(D) + causal bias
        scores = jax.lax.dot_general(
            q, k, (((1,), (1,)), ((), ())),
            preferred_element_type=jnp.float32)          # (S, S)
        scores = scores * scale + bias

        # softmax in f32: single reciprocal then multiply.
        m = jnp.max(scores, axis=-1, keepdims=True)
        e = jnp.exp(scores - m)
        p = e * pl.reciprocal(jnp.sum(e, axis=-1, keepdims=True))
        # dropout(p=0.0, training=False) -> identity

        attn_h = jnp.dot(p, v, preferred_element_type=jnp.float32)  # (S, D)
        # o_proj accumulated per head: sum_h attn_h @ Wo^T[h*D:(h+1)*D, :]
        acc = acc + jnp.dot(attn_h, wo_ref[h], preferred_element_type=jnp.float32)

    o_ref[0] = acc.astype(o_ref.dtype)                   # lane-dense (S, HIDDEN) store


def llama_ternary_attention(x, wq_pack, wk_pack, wv_pack, wo_pack, cos, sin, bias):
    """x: (B, S, HIDDEN) -> (B, S, HIDDEN). Single fused pallas_call, grid=(B,)."""
    Bq, Sq, Hd = x.shape
    kernel = functools.partial(_fused_attn_kernel, scale=1.0 / math.sqrt(HEAD_DIM))
    return pl.pallas_call(
        kernel,
        out_shape=jax.ShapeDtypeStruct((Bq, Sq, Hd), x.dtype),
        grid=(Bq,),
        in_specs=[
            pl.BlockSpec((1, Sq, Hd), lambda b: (b, 0, 0)),
            pl.BlockSpec(wq_pack.shape, lambda b: (0, 0, 0, 0)),
            pl.BlockSpec(wk_pack.shape, lambda b: (0, 0, 0, 0)),
            pl.BlockSpec(wv_pack.shape, lambda b: (0, 0, 0)),
            pl.BlockSpec(wo_pack.shape, lambda b: (0, 0, 0)),
            pl.BlockSpec(cos.shape, lambda b: (0, 0)),
            pl.BlockSpec(sin.shape, lambda b: (0, 0)),
            pl.BlockSpec(bias.shape, lambda b: (0, 0)),
        ],
        out_specs=pl.BlockSpec((1, Sq, Hd), lambda b: (b, 0, 0)),
        compiler_params=pltpu.CompilerParams(
            dimension_semantics=("parallel",)),
    )(x, wq_pack, wk_pack, wv_pack, wo_pack, cos, sin, bias)


# ----------------------------- parameter / RoPE setup (outside the trace) ----
def make_ternary_weight(key, out_features, in_features, sparsity):
    """Deterministic synthetic TernaryLinear weight: {-1,0,+1} * alpha, f32."""
    w = jax.random.normal(key, (out_features, in_features), jnp.float32)
    aw = jnp.abs(w)
    thresh = jnp.quantile(aw, sparsity)
    mask = aw > thresh
    alpha = jnp.sum(aw * mask) / jnp.maximum(jnp.sum(mask.astype(jnp.float32)), 1.0)
    return (jnp.where(mask, jnp.sign(w), 0.0) * alpha).astype(jnp.float32)


def rope_cos_sin(seq_len, dim, theta):
    inv_freq = 1.0 / (theta ** (np.arange(0, dim, 2, dtype=np.float32) / dim))
    pos = np.arange(seq_len, dtype=np.float32)
    freqs = np.outer(pos, inv_freq)                     # (S, D/2)
    emb = np.concatenate([freqs, freqs], axis=-1)       # (S, D)
    return jnp.asarray(np.cos(emb)), jnp.asarray(np.sin(emb))


def rotate_half_matrix(dim):
    """Signed permutation R with x @ R == rotate_half(x) = cat(-x[d/2:], x[:d/2])."""
    half = dim // 2
    r = np.zeros((dim, dim), dtype=np.float32)
    for j in range(half):
        r[j, j + half] = 1.0        # second output half gets +x[:half]
    for j in range(half, dim):
        r[j, j - half] = -1.0       # first output half gets -x[half:]
    return jnp.asarray(r)


def causal_bias(seq_len):
    neg = np.float32(np.finfo(np.float32).min)
    tril = np.tril(np.ones((seq_len, seq_len), dtype=bool))
    return jnp.asarray(np.where(tril, np.float32(0.0), neg))


def pack_params(wq, wk, wv, wo, rot):
    """One-time packing: per-head transposed weights with RoPE rotate folded in."""
    def qk_pack(w, n_heads):
        wt = jnp.transpose(w.reshape(n_heads, HEAD_DIM, HIDDEN), (0, 2, 1))  # (h,K,D)
        wt_rot = jnp.einsum("hkd,de->hke", wt, rot)                          # (h,K,D)
        return jnp.stack([wt, wt_rot], axis=1)                               # (h,2,K,D)

    wq_pack = qk_pack(wq, NUM_HEADS)                                         # (4,2,32,8)
    wk_pack = qk_pack(wk, NUM_KV_HEADS)                                      # (2,2,32,8)
    wv_pack = jnp.transpose(wv.reshape(NUM_KV_HEADS, HEAD_DIM, HIDDEN), (0, 2, 1))
    wo_pack = jnp.transpose(wo.reshape(HIDDEN, NUM_HEADS, HEAD_DIM), (1, 2, 0))  # (4,8,32)
    return wq_pack, wk_pack, wv_pack, wo_pack


# ----------------------------- pure-JAX reference (for verification) ---------
def reference(x, wq, wk, wv, wo, cos, sin):
    b, s, _ = x.shape
    q = (x @ wq.T).reshape(b, s, NUM_HEADS, HEAD_DIM).transpose(0, 2, 1, 3)
    k = (x @ wk.T).reshape(b, s, NUM_KV_HEADS, HEAD_DIM).transpose(0, 2, 1, 3)
    v = (x @ wv.T).reshape(b, s, NUM_KV_HEADS, HEAD_DIM).transpose(0, 2, 1, 3)

    def rot_half(t):
        return jnp.concatenate([-t[..., HEAD_DIM // 2:], t[..., :HEAD_DIM // 2]], -1)

    q = q * cos + rot_half(q) * sin
    k = k * cos + rot_half(k) * sin
    k = jnp.repeat(k, NUM_KV_GROUPS, axis=1)
    v = jnp.repeat(v, NUM_KV_GROUPS, axis=1)

    scores = jnp.einsum("bhqd,bhkd->bhqk", q, k) / math.sqrt(HEAD_DIM)
    mask = np.tril(np.ones((s, s), dtype=bool))
    scores = jnp.where(mask, scores, jnp.finfo(jnp.float32).min)
    p = jax.nn.softmax(scores.astype(jnp.float32), axis=-1)
    attn = jnp.einsum("bhqk,bhkd->bhqd", p, v)
    attn = attn.transpose(0, 2, 1, 3).reshape(b, s, NUM_HEADS * HEAD_DIM)
    return attn @ wo.T


# ----------------------------- main -------------------------------------------
if __name__ == "__main__":
    key = jax.random.PRNGKey(0)
    kx, kq, kk, kv, ko = jax.random.split(key, 5)

    x = jax.random.normal(kx, (B, S, HIDDEN), jnp.float32)
    wq = make_ternary_weight(kq, NUM_HEADS * HEAD_DIM, HIDDEN, SPARSITY)
    wk = make_ternary_weight(kk, NUM_KV_HEADS * HEAD_DIM, HIDDEN, SPARSITY)
    wv = make_ternary_weight(kv, NUM_KV_HEADS * HEAD_DIM, HIDDEN, SPARSITY)
    wo = make_ternary_weight(ko, HIDDEN, NUM_HEADS * HEAD_DIM, SPARSITY)

    cos, sin = rope_cos_sin(S, HEAD_DIM, ROPE_THETA)
    rot = rotate_half_matrix(HEAD_DIM)
    bias = causal_bias(S)

    # One-time constant packing (pre-transpose + RoPE fold) OUTSIDE the forward.
    wq_pack, wk_pack, wv_pack, wo_pack = pack_params(wq, wk, wv, wo, rot)
    wq_pack, wk_pack, wv_pack, wo_pack = jax.block_until_ready(
        (wq_pack, wk_pack, wv_pack, wo_pack))

    out = llama_ternary_attention(x, wq_pack, wk_pack, wv_pack, wo_pack, cos, sin, bias)
    out = jax.block_until_ready(out)

    ref = reference(x, wq, wk, wv, wo, cos, sin)
    np.testing.assert_allclose(np.asarray(out), np.asarray(ref), rtol=1e-4, atol=2e-4)

    print("KERNEL_OK")
</pallas_src>

<mosaic_0001>
module attributes {stable_mosaic.version = 11 : i64} {
  func.func @_fused_attn_kernel(%arg0: i32, %arg1: memref<1x8x32xf32, #tpu.memory_space<vmem>>, %arg2: memref<4x2x32x8xf32, #tpu.memory_space<vmem>>, %arg3: memref<2x2x32x8xf32, #tpu.memory_space<vmem>>, %arg4: memref<2x32x8xf32, #tpu.memory_space<vmem>>, %arg5: memref<4x8x32xf32, #tpu.memory_space<vmem>>, %arg6: memref<8x8xf32, #tpu.memory_space<vmem>>, %arg7: memref<8x8xf32, #tpu.memory_space<vmem>>, %arg8: memref<8x8xf32, #tpu.memory_space<vmem>>, %arg9: memref<1x8x32xf32, #tpu.memory_space<vmem>>) attributes {dimension_semantics = [#tpu.dimension_semantics<parallel>], iteration_bounds = array<i64: 2>, scalar_prefetch = 0 : i64, scratch_operands = 0 : i64, tpu.core_type = #tpu.core_type<tc>, window_params = [{transform_indices = @transform_0, window_bounds = array<i64: 1, 8, 32>}, {pipeline_mode = #tpu.pipeline_mode<synchronous>, transform_indices = @transform_1, window_bounds = array<i64: 4, 2, 32, 8>}, {pipeline_mode = #tpu.pipeline_mode<synchronous>, transform_indices = @transform_2, window_bounds = array<i64: 2, 2, 32, 8>}, {pipeline_mode = #tpu.pipeline_mode<synchronous>, transform_indices = @transform_3, window_bounds = array<i64: 2, 32, 8>}, {pipeline_mode = #tpu.pipeline_mode<synchronous>, transform_indices = @transform_4, window_bounds = array<i64: 4, 8, 32>}, {pipeline_mode = #tpu.pipeline_mode<synchronous>, transform_indices = @transform_5, window_bounds = array<i64: 8, 8>}, {pipeline_mode = #tpu.pipeline_mode<synchronous>, transform_indices = @transform_6, window_bounds = array<i64: 8, 8>}, {pipeline_mode = #tpu.pipeline_mode<synchronous>, transform_indices = @transform_7, window_bounds = array<i64: 8, 8>}, {transform_indices = @transform_8, window_bounds = array<i64: 1, 8, 32>}]} {
    %c0 = arith.constant 0 : index
    %c0_0 = arith.constant 0 : index
    %c0_1 = arith.constant 0 : index
    %0 = vector.load %arg1[%c0, %c0_0, %c0_1] : memref<1x8x32xf32, #tpu.memory_space<vmem>>, vector<1x8x32xf32>
    %1 = vector.shape_cast %0 : vector<1x8x32xf32> to vector<8x32xf32>
    %c0_2 = arith.constant 0 : index
    %c0_3 = arith.constant 0 : index
    %2 = vector.load %arg6[%c0_2, %c0_3] : memref<8x8xf32, #tpu.memory_space<vmem>>, vector<8x8xf32>
    %c0_4 = arith.constant 0 : index
    %c0_5 = arith.constant 0 : index
    %3 = vector.load %arg7[%c0_4, %c0_5] : memref<8x8xf32, #tpu.memory_space<vmem>>, vector<8x8xf32>
    %c0_6 = arith.constant 0 : index
    %c0_7 = arith.constant 0 : index
    %4 = vector.load %arg8[%c0_6, %c0_7] : memref<8x8xf32, #tpu.memory_space<vmem>>, vector<8x8xf32>
    %c0_8 = arith.constant 0 : index
    %c0_9 = arith.constant 0 : index
    %c0_10 = arith.constant 0 : index
    %c0_11 = arith.constant 0 : index
    %5 = vector.load %arg3[%c0_8, %c0_9, %c0_10, %c0_11] : memref<2x2x32x8xf32, #tpu.memory_space<vmem>>, vector<1x1x32x8xf32>
    %6 = vector.shape_cast %5 : vector<1x1x32x8xf32> to vector<32x8xf32>
    %cst = arith.constant dense<0.000000e+00> : vector<8x8xf32>
    %7 = tpu.matmul %1, %6, %cst {dimension_numbers = #tpu.dot_dimension_numbers<[1], [0], [0], [1], [0, 0, 1, 1], [], []>} : vector<8x32xf32>, vector<32x8xf32>, vector<8x8xf32> -> vector<8x8xf32>
    %c0_12 = arith.constant 0 : index
    %c1 = arith.constant 1 : index
    %c0_13 = arith.constant 0 : index
    %c0_14 = arith.constant 0 : index
    %8 = vector.load %arg3[%c0_12, %c1, %c0_13, %c0_14] : memref<2x2x32x8xf32, #tpu.memory_space<vmem>>, vector<1x1x32x8xf32>
    %9 = vector.shape_cast %8 : vector<1x1x32x8xf32> to vector<32x8xf32>
    %cst_15 = arith.constant dense<0.000000e+00> : vector<8x8xf32>
    %10 = tpu.matmul %1, %9, %cst_15 {dimension_numbers = #tpu.dot_dimension_numbers<[1], [0], [0], [1], [0, 0, 1, 1], [], []>} : vector<8x32xf32>, vector<32x8xf32>, vector<8x8xf32> -> vector<8x8xf32>
    %11 = arith.mulf %7, %2 : vector<8x8xf32>
    %12 = arith.mulf %10, %3 : vector<8x8xf32>
    %13 = arith.addf %11, %12 : vector<8x8xf32>
    %c0_16 = arith.constant 0 : index
    %c0_17 = arith.constant 0 : index
    %c0_18 = arith.constant 0 : index
    %14 = vector.load %arg4[%c0_16, %c0_17, %c0_18] : memref<2x32x8xf32, #tpu.memory_space<vmem>>, vector<1x32x8xf32>
    %15 = vector.shape_cast %14 : vector<1x32x8xf32> to vector<32x8xf32>
    %cst_19 = arith.constant dense<0.000000e+00> : vector<8x8xf32>
    %16 = tpu.matmul %1, %15, %cst_19 {dimension_numbers = #tpu.dot_dimension_numbers<[1], [0], [0], [1], [0, 0, 1, 1], [], []>} : vector<8x32xf32>, vector<32x8xf32>, vector<8x8xf32> -> vector<8x8xf32>
    %c1_20 = arith.constant 1 : index
    %c0_21 = arith.constant 0 : index
    %c0_22 = arith.constant 0 : index
    %c0_23 = arith.constant 0 : index
    %17 = vector.load %arg3[%c1_20, %c0_21, %c0_22, %c0_23] : memref<2x2x32x8xf32, #tpu.memory_space<vmem>>, vector<1x1x32x8xf32>
    %18 = vector.shape_cast %17 : vector<1x1x32x8xf32> to vector<32x8xf32>
    %cst_24 = arith.constant dense<0.000000e+00> : vector<8x8xf32>
    %19 = tpu.matmul %1, %18, %cst_24 {dimension_numbers = #tpu.dot_dimension_numbers<[1], [0], [0], [1], [0, 0, 1, 1], [], []>} : vector<8x32xf32>, vector<32x8xf32>, vector<8x8xf32> -> vector<8x8xf32>
    %c1_25 = arith.constant 1 : index
    %c1_26 = arith.constant 1 : index
    %c0_27 = arith.constant 0 : index
    %c0_28 = arith.constant 0 : index
    %20 = vector.load %arg3[%c1_25, %c1_26, %c0_27, %c0_28] : memref<2x2x32x8xf32, #tpu.memory_space<vmem>>, vector<1x1x32x8xf32>
    %21 = vector.shape_cast %20 : vector<1x1x32x8xf32> to vector<32x8xf32>
    %cst_29 = arith.constant dense<0.000000e+00> : vector<8x8xf32>
    %22 = tpu.matmul %1, %21, %cst_29 {dimension_numbers = #tpu.dot_dimension_numbers<[1], [0], [0], [1], [0, 0, 1, 1], [], []>} : vector<8x32xf32>, vector<32x8xf32>, vector<8x8xf32> -> vector<8x8xf32>
    %23 = arith.mulf %19, %2 : vector<8x8xf32>
    %24 = arith.mulf %22, %3 : vector<8x8xf32>
    %25 = arith.addf %23, %24 : vector<8x8xf32>
    %c1_30 = arith.constant 1 : index
    %c0_31 = arith.constant 0 : index
    %c0_32 = arith.constant 0 : index
    %26 = vector.load %arg4[%c1_30, %c0_31, %c0_32] : memref<2x32x8xf32, #tpu.memory_space<vmem>>, vector<1x32x8xf32>
    %27 = vector.shape_cast %26 : vector<1x32x8xf32> to vector<32x8xf32>
    %cst_33 = arith.constant dense<0.000000e+00> : vector<8x8xf32>
    %28 = tpu.matmul %1, %27, %cst_33 {dimension_numbers = #tpu.dot_dimension_numbers<[1], [0], [0], [1], [0, 0, 1, 1], [], []>} : vector<8x32xf32>, vector<32x8xf32>, vector<8x8xf32> -> vector<8x8xf32>
    %cst_34 = arith.constant 0.000000e+00 : f32
    %29 = vector.broadcast %cst_34 : f32 to vector<8x32xf32>
    %c0_35 = arith.constant 0 : index
    %c0_36 = arith.constant 0 : index
    %c0_37 = arith.constant 0 : index
    %c0_38 = arith.constant 0 : index
    %30 = vector.load %arg2[%c0_35, %c0_36, %c0_37, %c0_38] : memref<4x2x32x8xf32, #tpu.memory_space<vmem>>, vector<1x1x32x8xf32>
    %31 = vector.shape_cast %30 : vector<1x1x32x8xf32> to vector<32x8xf32>
    %cst_39 = arith.constant dense<0.000000e+00> : vector<8x8xf32>
    %32 = tpu.matmul %1, %31, %cst_39 {dimension_numbers = #tpu.dot_dimension_numbers<[1], [0], [0], [1], [0, 0, 1, 1], [], []>} : vector<8x32xf32>, vector<32x8xf32>, vector<8x8xf32> -> vector<8x8xf32>
    %c0_40 = arith.constant 0 : index
    %c1_41 = arith.constant 1 : index
    %c0_42 = arith.constant 0 : index
    %c0_43 = arith.constant 0 : index
    %33 = vector.load %arg2[%c0_40, %c1_41, %c0_42, %c0_43] : memref<4x2x32x8xf32, #tpu.memory_space<vmem>>, vector<1x1x32x8xf32>
    %34 = vector.shape_cast %33 : vector<1x1x32x8xf32> to vector<32x8xf32>
    %cst_44 = arith.constant dense<0.000000e+00> : vector<8x8xf32>
    %35 = tpu.matmul %1, %34, %cst_44 {dimension_numbers = #tpu.dot_dimension_numbers<[1], [0], [0], [1], [0, 0, 1, 1], [], []>} : vector<8x32xf32>, vector<32x8xf32>, vector<8x8xf32> -> vector<8x8xf32>
    %36 = arith.mulf %32, %2 : vector<8x8xf32>
    %37 = arith.mulf %35, %3 : vector<8x8xf32>
    %38 = arith.addf %36, %37 : vector<8x8xf32>
    %cst_45 = arith.constant dense<0.000000e+00> : vector<8x8xf32>
    %39 = tpu.matmul %38, %13, %cst_45 {dimension_numbers = #tpu.dot_dimension_numbers<[1], [1], [0], [0], [0, 0, 1, 0], [], []>} : vector<8x8xf32>, vector<8x8xf32>, vector<8x8xf32> -> vector<8x8xf32>
    %cst_46 = arith.constant 0.353553385 : f32
    %40 = vector.broadcast %cst_46 : f32 to vector<8x8xf32>
    %41 = arith.mulf %39, %40 : vector<8x8xf32>
    %42 = arith.addf %41, %4 : vector<8x8xf32>
    %cst_47 = arith.constant dense<0xFF800000> : vector<8xf32>
    %43 = vector.multi_reduction <maximumf>, %42, %cst_47 [1] : vector<8x8xf32> to vector<8xf32>
    %44 = vector.shape_cast %43 : vector<8xf32> to vector<8x1xf32>
    %45 = vector.broadcast %44 : vector<8x1xf32> to vector<8x8xf32>
    %46 = arith.subf %42, %45 : vector<8x8xf32>
    %47 = math.exp %46 : vector<8x8xf32>
    %cst_48 = arith.constant dense<0.000000e+00> : vector<8xf32>
    %48 = vector.multi_reduction <add>, %47, %cst_48 [1] : vector<8x8xf32> to vector<8xf32>
    %49 = vector.shape_cast %48 : vector<8xf32> to vector<8x1xf32>
    %50 = tpu.reciprocal %49 : vector<8x1xf32> -> vector<8x1xf32>
    %51 = vector.broadcast %50 : vector<8x1xf32> to vector<8x8xf32>
    %52 = arith.mulf %47, %51 : vector<8x8xf32>
    %cst_49 = arith.constant dense<0.000000e+00> : vector<8x8xf32>
    %53 = tpu.matmul %52, %16, %cst_49 {dimension_numbers = #tpu.dot_dimension_numbers<[1], [0], [0], [1], [0, 0, 1, 1], [], []>} : vector<8x8xf32>, vector<8x8xf32>, vector<8x8xf32> -> vector<8x8xf32>
    %c0_50 = arith.constant 0 : index
    %c0_51 = arith.constant 0 : index
    %c0_52 = arith.constant 0 : index
    %54 = vector.load %arg5[%c0_50, %c0_51, %c0_52] : memref<4x8x32xf32, #tpu.memory_space<vmem>>, vector<1x8x32xf32>
    %55 = vector.shape_cast %54 : vector<1x8x32xf32> to vector<8x32xf32>
    %cst_53 = arith.constant dense<0.000000e+00> : vector<8x32xf32>
    %56 = tpu.matmul %53, %55, %cst_53 {dimension_numbers = #tpu.dot_dimension_numbers<[1], [0], [0], [1], [0, 0, 1, 1], [], []>} : vector<8x8xf32>, vector<8x32xf32>, vector<8x32xf32> -> vector<8x32xf32>
    %57 = arith.addf %29, %56 : vector<8x32xf32>
    %c1_54 = arith.constant 1 : index
    %c0_55 = arith.constant 0 : index
    %c0_56 = arith.constant 0 : index
    %c0_57 = arith.constant 0 : index
    %58 = vector.load %arg2[%c1_54, %c0_55, %c0_56, %c0_57] : memref<4x2x32x8xf32, #tpu.memory_space<vmem>>, vector<1x1x32x8xf32>
    %59 = vector.shape_cast %58 : vector<1x1x32x8xf32> to vector<32x8xf32>
    %cst_58 = arith.constant dense<0.000000e+00> : vector<8x8xf32>
    %60 = tpu.matmul %1, %59, %cst_58 {dimension_numbers = #tpu.dot_dimension_numbers<[1], [0], [0], [1], [0, 0, 1, 1], [], []>} : vector<8x32xf32>, vector<32x8xf32>, vector<8x8xf32> -> vector<8x8xf32>
    %c1_59 = arith.constant 1 : index
    %c1_60 = arith.constant 1 : index
    %c0_61 = arith.constant 0 : index
    %c0_62 = arith.constant 0 : index
    %61 = vector.load %arg2[%c1_59, %c1_60, %c0_61, %c0_62] : memref<4x2x32x8xf32, #tpu.memory_space<vmem>>, vector<1x1x32x8xf32>
    %62 = vector.shape_cast %61 : vector<1x1x32x8xf32> to vector<32x8xf32>
    %cst_63 = arith.constant dense<0.000000e+00> : vector<8x8xf32>
    %63 = tpu.matmul %1, %62, %cst_63 {dimension_numbers = #tpu.dot_dimension_numbers<[1], [0], [0], [1], [0, 0, 1, 1], [], []>} : vector<8x32xf32>, vector<32x8xf32>, vector<8x8xf32> -> vector<8x8xf32>
    %64 = arith.mulf %60, %2 : vector<8x8xf32>
    %65 = arith.mulf %63, %3 : vector<8x8xf32>
    %66 = arith.addf %64, %65 : vector<8x8xf32>
    %cst_64 = arith.constant dense<0.000000e+00> : vector<8x8xf32>
    %67 = tpu.matmul %66, %13, %cst_64 {dimension_numbers = #tpu.dot_dimension_numbers<[1], [1], [0], [0], [0, 0, 1, 0], [], []>} : vector<8x8xf32>, vector<8x8xf32>, vector<8x8xf32> -> vector<8x8xf32>
    %cst_65 = arith.constant 0.353553385 : f32
    %68 = vector.broadcast %cst_65 : f32 to vector<8x8xf32>
    %69 = arith.mulf %67, %68 : vector<8x8xf32>
    %70 = arith.addf %69, %4 : vector<8x8xf32>
    %cst_66 = arith.constant dense<0xFF800000> : vector<8xf32>
    %71 = vector.multi_reduction <maximumf>, %70, %cst_66 [1] : vector<8x8xf32> to vector<8xf32>
    %72 = vector.shape_cast %71 : vector<8xf32> to vector<8x1xf32>
    %73 = vector.broadcast %72 : vector<8x1xf32> to vector<8x8xf32>
    %74 = arith.subf %70, %73 : vector<8x8xf32>
    %75 = math.exp %74 : vector<8x8xf32>
    %cst_67 = arith.constant dense<0.000000e+00> : vector<8xf32>
    %76 = vector.multi_reduction <add>, %75, %cst_67 [1] : vector<8x8xf32> to vector<8xf32>
    %77 = vector.shape_cast %76 : vector<8xf32> to vector<8x1xf32>
    %78 = tpu.reciprocal %77 : vector<8x1xf32> -> vector<8x1xf32>
    %79 = vector.broadcast %78 : vector<8x1xf32> to vector<8x8xf32>
    %80 = arith.mulf %75, %79 : vector<8x8xf32>
    %cst_68 = arith.constant dense<0.000000e+00> : vector<8x8xf32>
    %81 = tpu.matmul %80, %16, %cst_68 {dimension_numbers = #tpu.dot_dimension_numbers<[1], [0], [0], [1], [0, 0, 1, 1], [], []>} : vector<8x8xf32>, vector<8x8xf32>, vector<8x8xf32> -> vector<8x8xf32>
    %c1_69 = arith.constant 1 : index
    %c0_70 = arith.constant 0 : index
    %c0_71 = arith.constant 0 : index
    %82 = vector.load %arg5[%c1_69, %c0_70, %c0_71] : memref<4x8x32xf32, #tpu.memory_space<vmem>>, vector<1x8x32xf32>
    %83 = vector.shape_cast %82 : vector<1x8x32xf32> to vector<8x32xf32>
    %cst_72 = arith.constant dense<0.000000e+00> : vector<8x32xf32>
    %84 = tpu.matmul %81, %83, %cst_72 {dimension_numbers = #tpu.dot_dimension_numbers<[1], [0], [0], [1], [0, 0, 1, 1], [], []>} : vector<8x8xf32>, vector<8x32xf32>, vector<8x32xf32> -> vector<8x32xf32>
    %85 = arith.addf %57, %84 : vector<8x32xf32>
    %c2 = arith.constant 2 : index
    %c0_73 = arith.constant 0 : index
    %c0_74 = arith.constant 0 : index
    %c0_75 = arith.constant 0 : index
    %86 = vector.load %arg2[%c2, %c0_73, %c0_74, %c0_75] : memref<4x2x32x8xf32, #tpu.memory_space<vmem>>, vector<1x1x32x8xf32>
    %87 = vector.shape_cast %86 : vector<1x1x32x8xf32> to vector<32x8xf32>
    %cst_76 = arith.constant dense<0.000000e+00> : vector<8x8xf32>
    %88 = tpu.matmul %1, %87, %cst_76 {dimension_numbers = #tpu.dot_dimension_numbers<[1], [0], [0], [1], [0, 0, 1, 1], [], []>} : vector<8x32xf32>, vector<32x8xf32>, vector<8x8xf32> -> vector<8x8xf32>
    %c2_77 = arith.constant 2 : index
    %c1_78 = arith.constant 1 : index
    %c0_79 = arith.constant 0 : index
    %c0_80 = arith.constant 0 : index
    %89 = vector.load %arg2[%c2_77, %c1_78, %c0_79, %c0_80] : memref<4x2x32x8xf32, #tpu.memory_space<vmem>>, vector<1x1x32x8xf32>
    %90 = vector.shape_cast %89 : vector<1x1x32x8xf32> to vector<32x8xf32>
    %cst_81 = arith.constant dense<0.000000e+00> : vector<8x8xf32>
    %91 = tpu.matmul %1, %90, %cst_81 {dimension_numbers = #tpu.dot_dimension_numbers<[1], [0], [0], [1], [0, 0, 1, 1], [], []>} : vector<8x32xf32>, vector<32x8xf32>, vector<8x8xf32> -> vector<8x8xf32>
    %92 = arith.mulf %88, %2 : vector<8x8xf32>
    %93 = arith.mulf %91, %3 : vector<8x8xf32>
    %94 = arith.addf %92, %93 : vector<8x8xf32>
    %cst_82 = arith.constant dense<0.000000e+00> : vector<8x8xf32>
    %95 = tpu.matmul %94, %25, %cst_82 {dimension_numbers = #tpu.dot_dimension_numbers<[1], [1], [0], [0], [0, 0, 1, 0], [], []>} : vector<8x8xf32>, vector<8x8xf32>, vector<8x8xf32> -> vector<8x8xf32>
    %cst_83 = arith.constant 0.353553385 : f32
    %96 = vector.broadcast %cst_83 : f32 to vector<8x8xf32>
    %97 = arith.mulf %95, %96 : vector<8x8xf32>
    %98 = arith.addf %97, %4 : vector<8x8xf32>
    %cst_84 = arith.constant dense<0xFF800000> : vector<8xf32>
    %99 = vector.multi_reduction <maximumf>, %98, %cst_84 [1] : vector<8x8xf32> to vector<8xf32>
    %100 = vector.shape_cast %99 : vector<8xf32> to vector<8x1xf32>
    %101 = vector.broadcast %100 : vector<8x1xf32> to vector<8x8xf32>
    %102 = arith.subf %98, %101 : vector<8x8xf32>
    %103 = math.exp %102 : vector<8x8xf32>
    %cst_85 = arith.constant dense<0.000000e+00> : vector<8xf32>
    %104 = vector.multi_reduction <add>, %103, %cst_85 [1] : vector<8x8xf32> to vector<8xf32>
    %105 = vector.shape_cast %104 : vector<8xf32> to vector<8x1xf32>
    %106 = tpu.reciprocal %105 : vector<8x1xf32> -> vector<8x1xf32>
    %107 = vector.broadcast %106 : vector<8x1xf32> to vector<8x8xf32>
    %108 = arith.mulf %103, %107 : vector<8x8xf32>
    %cst_86 = arith.constant dense<0.000000e+00> : vector<8x8xf32>
    %109 = tpu.matmul %108, %28, %cst_86 {dimension_numbers = #tpu.dot_dimension_numbers<[1], [0], [0], [1], [0, 0, 1, 1], [], []>} : vector<8x8xf32>, vector<8x8xf32>, vector<8x8xf32> -> vector<8x8xf32>
    %c2_87 = arith.constant 2 : index
    %c0_88 = arith.constant 0 : index
    %c0_89 = arith.constant 0 : index
    %110 = vector.load %arg5[%c2_87, %c0_88, %c0_89] : memref<4x8x32xf32, #tpu.memory_space<vmem>>, vector<1x8x32xf32>
    %111 = vector.shape_cast %110 : vector<1x8x32xf32> to vector<8x32xf32>
    %cst_90 = arith.constant dense<0.000000e+00> : vector<8x32xf32>
    %112 = tpu.matmul %109, %111, %cst_90 {dimension_numbers = #tpu.dot_dimension_numbers<[1], [0], [0], [1], [0, 0, 1, 1], [], []>} : vector<8x8xf32>, vector<8x32xf32>, vector<8x32xf32> -> vector<8x32xf32>
    %113 = arith.addf %85, %112 : vector<8x32xf32>
    %c3 = arith.constant 3 : index
    %c0_91 = arith.constant 0 : index
    %c0_92 = arith.constant 0 : index
    %c0_93 = arith.constant 0 : index
    %114 = vector.load %arg2[%c3, %c0_91, %c0_92, %c0_93] : memref<4x2x32x8xf32, #tpu.memory_space<vmem>>, vector<1x1x32x8xf32>
    %115 = vector.shape_cast %114 : vector<1x1x32x8xf32> to vector<32x8xf32>
    %cst_94 = arith.constant dense<0.000000e+00> : vector<8x8xf32>
    %116 = tpu.matmul %1, %115, %cst_94 {dimension_numbers = #tpu.dot_dimension_numbers<[1], [0], [0], [1], [0, 0, 1, 1], [], []>} : vector<8x32xf32>, vector<32x8xf32>, vector<8x8xf32> -> vector<8x8xf32>
    %c3_95 = arith.constant 3 : index
    %c1_96 = arith.constant 1 : index
    %c0_97 = arith.constant 0 : index
    %c0_98 = arith.constant 0 : index
    %117 = vector.load %arg2[%c3_95, %c1_96, %c0_97, %c0_98] : memref<4x2x32x8xf32, #tpu.memory_space<vmem>>, vector<1x1x32x8xf32>
    %118 = vector.shape_cast %117 : vector<1x1x32x8xf32> to vector<32x8xf32>
    %cst_99 = arith.constant dense<0.000000e+00> : vector<8x8xf32>
    %119 = tpu.matmul %1, %118, %cst_99 {dimension_numbers = #tpu.dot_dimension_numbers<[1], [0], [0], [1], [0, 0, 1, 1], [], []>} : vector<8x32xf32>, vector<32x8xf32>, vector<8x8xf32> -> vector<8x8xf32>
    %120 = arith.mulf %116, %2 : vector<8x8xf32>
    %121 = arith.mulf %119, %3 : vector<8x8xf32>
    %122 = arith.addf %120, %121 : vector<8x8xf32>
    %cst_100 = arith.constant dense<0.000000e+00> : vector<8x8xf32>
    %123 = tpu.matmul %122, %25, %cst_100 {dimension_numbers = #tpu.dot_dimension_numbers<[1], [1], [0], [0], [0, 0, 1, 0], [], []>} : vector<8x8xf32>, vector<8x8xf32>, vector<8x8xf32> -> vector<8x8xf32>
    %cst_101 = arith.constant 0.353553385 : f32
    %124 = vector.broadcast %cst_101 : f32 to vector<8x8xf32>
    %125 = arith.mulf %123, %124 : vector<8x8xf32>
    %126 = arith.addf %125, %4 : vector<8x8xf32>
    %cst_102 = arith.constant dense<0xFF800000> : vector<8xf32>
    %127 = vector.multi_reduction <maximumf>, %126, %cst_102 [1] : vector<8x8xf32> to vector<8xf32>
    %128 = vector.shape_cast %127 : vector<8xf32> to vector<8x1xf32>
    %129 = vector.broadcast %128 : vector<8x1xf32> to vector<8x8xf32>
    %130 = arith.subf %126, %129 : vector<8x8xf32>
    %131 = math.exp %130 : vector<8x8xf32>
    %cst_103 = arith.constant dense<0.000000e+00> : vector<8xf32>
    %132 = vector.multi_reduction <add>, %131, %cst_103 [1] : vector<8x8xf32> to vector<8xf32>
    %133 = vector.shape_cast %132 : vector<8xf32> to vector<8x1xf32>
    %134 = tpu.reciprocal %133 : vector<8x1xf32> -> vector<8x1xf32>
    %135 = vector.broadcast %134 : vector<8x1xf32> to vector<8x8xf32>
    %136 = arith.mulf %131, %135 : vector<8x8xf32>
    %cst_104 = arith.constant dense<0.000000e+00> : vector<8x8xf32>
    %137 = tpu.matmul %136, %28, %cst_104 {dimension_numbers = #tpu.dot_dimension_numbers<[1], [0], [0], [1], [0, 0, 1, 1], [], []>} : vector<8x8xf32>, vector<8x8xf32>, vector<8x8xf32> -> vector<8x8xf32>
    %c3_105 = arith.constant 3 : index
    %c0_106 = arith.constant 0 : index
    %c0_107 = arith.constant 0 : index
    %138 = vector.load %arg5[%c3_105, %c0_106, %c0_107] : memref<4x8x32xf32, #tpu.memory_space<vmem>>, vector<1x8x32xf32>
    %139 = vector.shape_cast %138 : vector<1x8x32xf32> to vector<8x32xf32>
    %cst_108 = arith.constant dense<0.000000e+00> : vector<8x32xf32>
    %140 = tpu.matmul %137, %139, %cst_108 {dimension_numbers = #tpu.dot_dimension_numbers<[1], [0], [0], [1], [0, 0, 1, 1], [], []>} : vector<8x8xf32>, vector<8x32xf32>, vector<8x32xf32> -> vector<8x32xf32>
    %141 = arith.addf %113, %140 : vector<8x32xf32>
    %c0_109 = arith.constant 0 : index
    %c0_110 = arith.constant 0 : index
    %c0_111 = arith.constant 0 : index
    %142 = vector.load %arg9[%c0_109, %c0_110, %c0_111] : memref<1x8x32xf32, #tpu.memory_space<vmem>>, vector<1x8x32xf32>
    %143 = vector.shape_cast %142 : vector<1x8x32xf32> to vector<8x32xf32>
    %144 = vector.shape_cast %141 : vector<8x32xf32> to vector<1x8x32xf32>
    tpu.vector_store %arg9[%c0_109, %c0_110, %c0_111], %144 {strides = array<i32>} : memref<1x8x32xf32, #tpu.memory_space<vmem>>, vector<1x8x32xf32>,
    return
  }
  func.func @transform_0(%arg0: i32) -> (i32, i32, i32) {
    %c0_i32 = arith.constant 0 : i32
    %c0_i32_0 = arith.constant 0 : i32
    %c0_i32_1 = arith.constant 0 : i32
    return %arg0, %c0_i32, %c0_i32_0 : i32, i32, i32
  }
  func.func @transform_1(%arg0: i32) -> (i32, i32, i32, i32) {
    %c0_i32 = arith.constant 0 : i32
    %c0_i32_0 = arith.constant 0 : i32
    %c0_i32_1 = arith.constant 0 : i32
    %c0_i32_2 = arith.constant 0 : i32
    %c0_i32_3 = arith.constant 0 : i32
    return %c0_i32, %c0_i32_0, %c0_i32_1, %c0_i32_2 : i32, i32, i32, i32
  }
  func.func @transform_2(%arg0: i32) -> (i32, i32, i32, i32) {
    %c0_i32 = arith.constant 0 : i32
    %c0_i32_0 = arith.constant 0 : i32
    %c0_i32_1 = arith.constant 0 : i32
    %c0_i32_2 = arith.constant 0 : i32
    %c0_i32_3 = arith.constant 0 : i32
    return %c0_i32, %c0_i32_0, %c0_i32_1, %c0_i32_2 : i32, i32, i32, i32
  }
  func.func @transform_3(%arg0: i32) -> (i32, i32, i32) {
    %c0_i32 = arith.constant 0 : i32
    %c0_i32_0 = arith.constant 0 : i32
    %c0_i32_1 = arith.constant 0 : i32
    %c0_i32_2 = arith.constant 0 : i32
    return %c0_i32, %c0_i32_0, %c0_i32_1 : i32, i32, i32
  }
  func.func @transform_4(%arg0: i32) -> (i32, i32, i32) {
    %c0_i32 = arith.constant 0 : i32
    %c0_i32_0 = arith.constant 0 : i32
    %c0_i32_1 = arith.constant 0 : i32
    %c0_i32_2 = arith.constant 0 : i32
    return %c0_i32, %c0_i32_0, %c0_i32_1 : i32, i32, i32
  }
  func.func @transform_5(%arg0: i32) -> (i32, i32) {
    %c0_i32 = arith.constant 0 : i32
    %c0_i32_0 = arith.constant 0 : i32
    %c0_i32_1 = arith.constant 0 : i32
    return %c0_i32, %c0_i32_0 : i32, i32
  }
  func.func @transform_6(%arg0: i32) -> (i32, i32) {
    %c0_i32 = arith.constant 0 : i32
    %c0_i32_0 = arith.constant 0 : i32
    %c0_i32_1 = arith.constant 0 : i32
    return %c0_i32, %c0_i32_0 : i32, i32
  }
  func.func @transform_7(%arg0: i32) -> (i32, i32) {
    %c0_i32 = arith.constant 0 : i32
    %c0_i32_0 = arith.constant 0 : i32
    %c0_i32_1 = arith.constant 0 : i32
    return %c0_i32, %c0_i32_0 : i32, i32
  }
  func.func @transform_8(%arg0: i32) -> (i32, i32, i32) {
    %c0_i32 = arith.constant 0 : i32
    %c0_i32_0 = arith.constant 0 : i32
    %c0_i32_1 = arith.constant 0 : i32
    return %arg0, %c0_i32, %c0_i32_0 : i32, i32, i32
  }
}

</mosaic_0001>

<bundles_post_ra>
// kernel: tpu_custom_call.1
= control target key start
LH: loop header
LB: loop body
LE: loop exit
PB: predicated region body
PF: predicated region fallthrough
CT: control target
= control target key end

     0   :  { %13 = vsyncpa [#allocation3], 0  ;;  %s1755_s0 = inlined_call_operand.vmem [shape: f32[2,8,32], index: 0, kind: input, shape index: {}]   ;;  %s1756_s1 = inlined_call_operand.vmem [shape: f32[4,2,32,8], index: 1, kind: input, shape index: {}]   ;;  %s1757_s2 = inlined_call_operand.vmem [shape: f32[2,2,32,8], index: 2, kind: input, shape index: {}]   ;;  %s1758_s3 = inlined_call_operand.vmem [shape: f32[2,32,8], index: 3, kind: input, shape index: {}]   ;;  %s1759_s4 = inlined_call_operand.vmem [shape: f32[4,8,32], index: 4, kind: input, shape index: {}]   ;;  %s1760_s5 = inlined_call_operand.vmem [shape: f32[8,8], index: 5, kind: input, shape index: {}]   ;;  %s1761_s6 = inlined_call_operand.vmem [shape: f32[8,8], index: 6, kind: input, shape index: {}]   ;;  %s1762_s7 = inlined_call_operand.vmem [shape: f32[8,8], index: 7, kind: input, shape index: {}]   ;;  %s1763_s8 = inlined_call_operand.hbm [shape: f32[2,8,32], index: 8, kind: output, shape index: {}]  }
   0x1   :  { %15 = vsyncpa [#allocation3 + $0x1], 0  ;;  %s1397_s27 = smov 0   ;;  %s1399_s28 = smov 0  }
   0x2   :  { %s1401_s29 = smov 0   ;;  %s1403_s30 = smov 0  }
   0x3 LB: > { %s1418_s9 = sadd.s32 4294967295, %s1350_s30   ;;  %s1146_s10 = sadd.s32 4294967294, %s1350_s30   ;;  %s1350_s30 = sphi %s1403_s30, %s1769_s30   ;;  %s1346_s29 = sphi %s1401_s29, %s1768_s29   ;;  %s1342_s28 = sphi %s1399_s28, %s1767_s28   ;;  %s1338_s27 = sphi %s1397_s27, %s1766_s27  }
   0x4   : > { %s1422_s11 = sadd.s32 1, %s1350_s30   ;;  %s201_s12 = sadd.s32 1, %s1346_s29 }
   0x5   : > { %s198_s13 = ssub.s32 %s1350_s30, %s1422_s11  ;;  %p211_p0 = scmp.ne.s32.totalorder %s1346_s29, %s1342_s28 }
   0x6   : > { %p199_p1 = scmp.eq.s32.totalorder %s198_s13, 0  ;;  %p212_p2 = scmp.eq.s32.totalorder %s1418_s9, 1 }
   0x7   : > { %p217_p3 = scmp.ne.s32.totalorder %s1342_s28, %s1338_s27  ;;  %p218_p4 = scmp.eq.s32.totalorder %s1146_s10, 1 }
   0x8   : > { %s1433_s14 = scalar_select %p199_p1, %s1346_s29, %s201_s12  }
   0x9   : > { %p1435_p5 = por %p212_p2, %p211_p0  ;;  %p1439_p6 = por %p218_p4, %p217_p3 }
   0xa   : > { %p1149_p7 = scmp.ge.s32.totalorder %s1350_s30, 1  ;;  %p264_p8 = scmp.lt.s32.totalorder %s1350_s30, 3 }
   0xc   : > { %p265_p9 = pnand %p1149_p7, %p264_p8 }
   0xd   : > { %p297_p10 = scmp.lt.s32.totalorder (!%p265_p9), %s1418_s9, 1  ;;  %s294_s18 = sand.u32 (!%p265_p9), 1, %s1342_s28  }
   0xe   : > { %268 = sbr.rel (%p265_p9) target bundleno = 1779 (0x6f3), region = 52  ;;  %s1150_s19 = sshll.u32 (!%p265_p9), %s294_s18, 3 }
   0xf   : > { %s1230_s21 = sshll.u32 (!%p265_p9), %s1418_s9, 3  ;;  %s1072_s10 = scalar_lea.sflag (!%p265_p9), [#allocation3], %s294_s18 }
  0x13   : > { %v308_v0 = vld [vmem:[%s1757_s2 + $0x18] sm:$0xff]  ;;  %v307_v3 = vld [vmem:[%s1757_s2 + $0x10] sm:$0xff]  ;;  %v306_v6 = vld [vmem:[%s1757_s2 + $0x8] sm:$0xff]  ;;  %s298_s20 = scalar_select %p297_p10, %s1418_s9, 1  ;;  %vm309_vm0 = vcmask 261120   ;;  %vm515_vm1 = vcmask 64512  }
  0x14   : > { %v364_v1 = vld [vmem:[%s1758_s3 + $0x18] sm:$0xff]  ;;  %325 = vmatpush.msra.mxu0 %v308_v0  ;;  %v363_v4 = vld [vmem:[%s1758_s3 + $0x10] sm:$0xff]  ;;  %v362_v7 = vld [vmem:[%s1758_s3 + $0x8] sm:$0xff] }
  0x15   : > { %v1162_v2 = vld [vmem:[%s1757_s2 + $0x58] sm:$0xff]  ;;  %377 = vmatpush.msra.mxu2 %v364_v1  ;;  %v1161_v5 = vld [vmem:[%s1757_s2 + $0x50] sm:$0xff]  ;;  %v1160_v8 = vld [vmem:[%s1757_s2 + $0x48] sm:$0xff]  ;;  %s1151_s13 = sshll.u32 %s298_s20, 3  ;;  %s296_s20 = scalar_lea.vmem [#allocation2], %s1150_s19 }
  0x16   : > { %402 = vmatpush.msra.mxu3 %v1162_v2  ;;  %326 = vmatpush.msra.mxu0 %v307_v3  ;;  %v1156_v9 = vld [vmem:[%s1757_s2 + $0x38] sm:$0xff]  ;;  %v305_v10 = vld [vmem:[%s1757_s2] sm:$0xff]  ;;  %v1155_v12 = vld [vmem:[%s1757_s2 + $0x30] sm:$0xff]  ;;  %s300_s24 = scalar_lea.vmem %s1755_s0, %s1151_s13  ;;  %s1084_s25 = sshll.u32 %s296_s20, 4  ;;  %s1085_s25 = int_to_ptr.vmem [resolvable:$true] %s1084_s25 }
  0x17   : > { %378 = vmatpush.msra.mxu2 %v363_v4  ;;  %350 = vmatpush.msra.mxu1 %v1156_v9  ;;  %v361_v11 = vld [vmem:[%s1758_s3] sm:$0xff]  ;;  %v466_v15 = vld [vmem:[%s1756_s1 + $0x18] sm:$0xff]  ;;  %v1154_v18 = vld [vmem:[%s1757_s2 + $0x28] sm:$0xff]  ;;  %s1308_s19 = scalar_lea.hbm %s1763_s8, 16 }
  0x18   : > { %403 = vmatpush.msra.mxu3 %v1161_v5  ;;  %327 = vmatpush.msra.mxu0 %v306_v6  ;;  %v1159_v13 = vld [vmem:[%s1757_s2 + $0x40] sm:$0xff]  ;;  %v1178_v16 = vld [vmem:[%s1756_s1 + $0x38] sm:$0xff]  ;;  %v465_v19 = vld [vmem:[%s1756_s1 + $0x10] sm:$0xff] }
  0x19   : > { %379 = vmatpush.msra.mxu2 %v362_v7  ;;  %v1492_v14 = vld [vmem:[%s300_s24] sm:$0xff]  ;;  %351 = vmatpush.msra.mxu1 %v1155_v12  ;;  %v1167_v17 = vld [vmem:[%s1757_s2 + $0x78] sm:$0xff]  ;;  %v1177_v20 = vld [vmem:[%s1756_s1 + $0x30] sm:$0xff]  ;;  %s1082_s24 = scalar_lea.hbm %s1763_s8, %s1230_s21 }
  0x1a   : > { %404 = vmatpush.msra.mxu3 %v1160_v8  ;;  %328 = vmatpush.msra.mxu0 %v305_v10  ;;  %v1166_v21 = vld [vmem:[%s1757_s2 + $0x70] sm:$0xff]  ;;  %v1153_v22 = vld [vmem:[%s1757_s2 + $0x20] sm:$0xff]  ;;  %v464_v23 = vld [vmem:[%s1756_s1 + $0x8] sm:$0xff]  ;;  %s1086_s26 = sshll.u32 %s1082_s24, 4  ;;  %s1087_s26 = int_to_ptr.hbm [resolvable:$true] %s1086_s26 }
  0x1b   : > { %380 = vmatpush.msra.mxu2 %v361_v11  ;;  %1152 = vmatmul.msk.f32.vlgmr.msra.gmra.mxu0 %vm309_vm0, %v1492_v14  ;;  %v1176_v24 = vld [vmem:[%s1756_s1 + $0x28] sm:$0xff]  ;;  %v463_v26 = vld [vmem:[%s1756_s1] sm:$0xff]  ;;  %v1186_v29 = vld [vmem:[%s1756_s1 + $0x58] sm:$0xff]  ;;  %s1302_s12 = sshra.s32 %s1087_s26, 4  ;;  %s1303_s12 = int_to_ptr.hbm [resolvable:$true] %s1302_s12 }
  0x1c   : > { %405 = vmatpush.msra.mxu3 %v1159_v13  ;;  %1158 = vmatmul.msk.f32.vlgmr.msra.gmra.mxu2 %vm309_vm0, %v1492_v14  ;;  %v1165_v25 = vld [vmem:[%s1757_s2 + $0x68] sm:$0xff]  ;;  %v1175_v27 = vld [vmem:[%s1756_s1 + $0x20] sm:$0xff]  ;;  %v1191_v30 = vld [vmem:[%s1756_s1 + $0x78] sm:$0xff]  ;;  %s1304_s9 = scalar_lea.hbm %s1303_s12, 8  ;;  %p1309_p0 = scmp.lt.s32.totalorder %s1303_s12, %s1763_s8 }
  0x1d   : > { %1163 = vmatmul.msk.f32.vlgmr.msra.gmra.mxu3 %vm309_vm0, %v1492_v14  ;;  %479 = vmatpush.msrb.mxu2 %v466_v15  ;;  %v1164_v28 = vld [vmem:[%s1757_s2 + $0x60] sm:$0xff]  ;;  %v1185_v31 = vld [vmem:[%s1756_s1 + $0x50] sm:$0xff]  ;;  %v1184_v33 = vld [vmem:[%s1756_s1 + $0x48] sm:$0xff]  ;;  %p1305_p11 = scmp.ne.s32.totalorder %s1303_s12, %s1304_s9  ;;  %p1310_p1 = scmp.lt.s32.totalorder %s1308_s19, %s1304_s9 }
  0x1e   : > { %504 = vmatpush.msrb.mxu3 %v1178_v16  ;;  %427 = vmatpush.msrb.mxu0 %v1167_v17  ;;  %v1190_v32 = vld [vmem:[%s1756_s1 + $0x70] sm:$0xff]  ;;  %v1189_v34 = vld [vmem:[%s1756_s1 + $0x68] sm:$0xff]  ;;  %v1183_v35 = vld [vmem:[%s1756_s1 + $0x40] sm:$0xff] }
  0x1f   : > { %352 = vmatpush.msra.mxu1 %v1154_v18  ;;  %480 = vmatpush.msrb.mxu2 %v465_v19  ;;  %v1188_v36 = vld [vmem:[%s1756_s1 + $0x60] sm:$0xff]  ;;  %v1172_v37 = vld [vmem:[%s1758_s3 + $0x38] sm:$0xff]  ;;  %v1171_v38 = vld [vmem:[%s1758_s3 + $0x30] sm:$0xff]  ;;  %p1306_p12 = pnand %p1305_p11, %p1435_p5  ;;  %p1311_p2 = por %p1310_p1, %p1309_p0 }
  0x20   : > { %505 = vmatpush.msrb.mxu3 %v1177_v20  ;;  %428 = vmatpush.msrb.mxu0 %v1166_v21  ;;  %v1170_v39 = vld [vmem:[%s1758_s3 + $0x28] sm:$0xff]  ;;  %v1169_v40 = vld [vmem:[%s1758_s3 + $0x20] sm:$0xff]  ;;  %v1202_v21 = vld [vmem:[%s1756_s1 + $0x98] sm:$0xff] }
  0x21   : > { %353 = vmatpush.msra.mxu1 %v1153_v22  ;;  %481 = vmatpush.msrb.mxu2 %v464_v23  ;;  %v1196_v41 = vld [vmem:[%s1759_s4 + $0x8] sm:$0xff]  ;;  %v1598_v43 = vld [vmem:[%s1760_s5] sm:$0xff]  ;;  %v1201_v22 = vld [vmem:[%s1756_s1 + $0x90] sm:$0xff]  ;;  %p1307_p13 = pneg %p1306_p12 }
  0x22   : > { %506 = vmatpush.msrb.mxu3 %v1176_v24  ;;  %1157 = vmatmul.msk.f32.vlgmr.msra.gmra.mxu1 %vm309_vm0, %v1492_v14  ;;  %v1604_v45 = vld [vmem:[%s1761_s6] sm:$0xff]  ;;  %v1200_v23 = vld [vmem:[%s1756_s1 + $0x88] sm:$0xff] }
  0x23   : > { %429 = vmatpush.msrb.mxu0 %v1165_v25  ;;  %482 = vmatpush.msrb.mxu2 %v463_v26  ;;  %v1624_v2 = vld [vmem:[%s1762_s7] sm:$0xff]  ;;  %p1312_p3 = pnand %p1311_p2, %p1307_p13 }
  0x24   : > { %507 = vmatpush.msrb.mxu3 %v1175_v27  ;;  %1174 = vmatmul.msk.f32.vlgmr.msrb.gmra.mxu2 %vm309_vm0, %v1492_v14  ;;  %v1199_v25 = vld [vmem:[%s1756_s1 + $0x80] sm:$0xff] }
  0x25   : > { %430 = vmatpush.msrb.mxu0 %v1164_v28  ;;  %1179 = vmatmul.msk.f32.vlgmr.msrb.gmra.mxu3 %vm309_vm0, %v1492_v14  ;;  %v591_v27 = vld [vmem:[%s1759_s4] sm:$0xff]  ;;  %v1212_v28 = vld [vmem:[%s1759_s4 + $0x10] sm:$0xff] }
  0x26   : > { %1168 = vmatmul.msk.f32.vlgmr.msrb.gmra.mxu0 %vm309_vm0, %v1492_v14  ;;  %609 = vmatpush.msra.mxu2 %v1186_v29 }
  0x27   : > { %634 = vmatpush.msra.mxu3 %v1191_v30  ;;  %455 = vmatpush.msrb.mxu1 %v1172_v37 }
  0x28   : > { %610 = vmatpush.msra.mxu2 %v1185_v31 }
  0x29   : > { %635 = vmatpush.msra.mxu3 %v1190_v32  ;;  %456 = vmatpush.msrb.mxu1 %v1171_v38 }
  0x2a   : > { %611 = vmatpush.msra.mxu2 %v1184_v33 }
  0x2b   : > { %636 = vmatpush.msra.mxu3 %v1189_v34  ;;  %457 = vmatpush.msrb.mxu1 %v1170_v39 }
  0x2c   : > { %612 = vmatpush.msra.mxu2 %v1183_v35 }
  0x2d   : > { %637 = vmatpush.msra.mxu3 %v1188_v36  ;;  %1187 = vmatmul.msk.f32.vlgmr.msra.gmra.mxu2 %vm309_vm0, %v1492_v14 }
  0x2e   : > { %1192 = vmatmul.msk.f32.vlgmr.msra.gmra.mxu3 %vm309_vm0, %v1492_v14  ;;  %458 = vmatpush.msrb.mxu1 %v1169_v40 }
  0x2f   : > { %1173 = vmatmul.msk.f32.vlgmr.msrb.gmra.mxu1 %vm309_vm0, %v1492_v14  ;;  %737 = vmatpush.msrb.mxu2 %v1196_v41 }
  0x30   : > { %760 = vmatpush.msrb.mxu3 %v591_v27 }
  0x98   : > { %v330_v42 = vpop.f32.mrf.mxu0 }
  0x99   : > { %v358_v44 = vmul.f32 %v330_v42, %v1598_v43 }
  0x9f   : > { %v355_v46 = vpop.f32.mrf.mxu1  ;;  %v382_v47 = vpop.f32.mrf.mxu2 }
  0xa0   : > { %v359_v48 = vmul.f32 %v355_v46, %v1604_v45  ;;  %v407_v49 = vpop.f32.mrf.mxu3  ;;  %586 = vmatpush.msra.mxu1 %v382_v47  ;;  %v1207_v46 = vld [vmem:[%s1756_s1 + $0xb8] sm:$0xff] }
  0xa1   : > { %v435_v52 = vmul.f32 %v407_v49, %v1598_v43 }
  0xa2   : > { %712 = vmatpush.msrb.mxu1 %v382_v47  ;;  %v360_v50 = vadd.f32 %v359_v48, %v358_v44 }
  0xa3   : > { %v432_v51 = vpop.f32.mrf.mxu0 }
  0xa4   : > { %v436_v53 = vmul.f32 %v432_v51, %v1604_v45  ;;  %1180 = vmatpush.xpose.msk.msra.mxu0 %vm515_vm1, %v360_v50 }
  0xa6   : > { %v1610_v54 = vadd.f32 %v436_v53, %v435_v52  ;;  %v1205_v52 = vld [vmem:[%s1756_s1 + $0xa8] sm:$0xff] }
  0xa7   : > { %v484_v55 = vpop.f32.mrf.mxu2 }
  0xa8   : > { %1193 = vmatpush.xpose.msk.msrb.mxu0 %vm515_vm1, %v360_v50  ;;  %1209 = vmatpush.xpose.msk.msra.mxu2 %vm515_vm1, %v1610_v54  ;;  %v512_v56 = vmul.f32 %v484_v55, %v1598_v43  ;;  %v509_v57 = vpop.f32.mrf.mxu3  ;;  %v1206_v50 = vld [vmem:[%s1756_s1 + $0xb0] sm:$0xff] }
  0xa9   : > { %v513_v58 = vmul.f32 %v509_v57, %v1604_v45 }
  0xab   : > { %v514_v59 = vadd.f32 %v513_v58, %v512_v56  ;;  %v1204_v56 = vld [vmem:[%s1756_s1 + $0xa0] sm:$0xff] }
  0xac   : > { %v460_v26 = vpop.f32.mrf.mxu1 }
  0xad   : > { %1181 = vmatmul.msk.f32.vlgmr.msra.gmra.mxu0 %vm515_vm1, %v514_v59  ;;  %888 = vmatpush.msra.mxu3 %v460_v26 }
  0xae   : > { %782 = vmatpush.msra.mxu0 %v1202_v21 }
  0xb0   : > { %v614_v60 = vpop.f32.mrf.mxu2  ;;  %783 = vmatpush.msra.mxu0 %v1201_v22 }
  0xb1   : > { %v639_v61 = vpop.f32.mrf.mxu3  ;;  %v642_v62 = vmul.f32 %v614_v60, %v1598_v43 }
  0xb2   : > { %v643_v63 = vmul.f32 %v639_v61, %v1604_v45  ;;  %784 = vmatpush.msra.mxu0 %v1200_v23 }
  0xb4   : > { %v644_v0 = vadd.f32 %v643_v63, %v642_v62  ;;  %785 = vmatpush.msra.mxu0 %v1199_v25 }
  0xb6   : > { %1194 = vmatmul.msk.f32.vlgmr.msrb.gmra.mxu0 %vm515_vm1, %v644_v0 }
  0xb7   : > { %913 = vmatpush.msrb.mxu0 %v1212_v28 }
  0xbe   : > { %1203 = vmatmul.msk.f32.vlgmr.msra.gmra.mxu0 %vm309_vm0, %v1492_v14 }
  0xbf   : > { %1039 = vmatpush.msra.mxu0 %v460_v26 }
 0x12a   : > { %v539_v1 = vpop.f32.mrf.mxu0 }
 0x12b   : > { %v542_v3 = vmul.f32 0.35355338, %v539_v1 }
 0x12d   : > { %v543_v4 = vadd.f32 %v542_v3, %v1624_v2 }
 0x12f   : > { %v544_v5 = vsel %vm515_vm1, %v543_v4, -inf }
 0x130   : > { %545 = vmax.xlane.f32.xlu0 %v544_v5 }
 0x133   : > { %v665_v6 = vpop.f32.mrf.mxu0 }
 0x134   : > { %v668_v7 = vmul.f32 0.35355338, %v665_v6 }
 0x136   : > { %v669_v8 = vadd.f32 %v668_v7, %v1624_v2  ;;  %v1222_v7 = vld [vmem:[%s1756_s1 + $0xf8] sm:$0xff] }
 0x138   : > { %v670_v9 = vsel %vm515_vm1, %v669_v8, -inf }
 0x139   : > { %671 = vmax.xlane.f32.xlu0 %v670_v9  ;;  %v1220_v9 = vld [vmem:[%s1756_s1 + $0xe8] sm:$0xff] }
 0x13b   : > { %v787_v61 = vpop.f32.mrf.mxu0 }
 0x13c   : > { %v815_v62 = vmul.f32 %v787_v61, %v1598_v43 }
 0x1a3   : > { %v546_v10 = vpop.xlane.xlu0 %545 }
 0x1a4   : > { %v547_v11 = vsub.f32 %v543_v4, %v546_v10  ;;  %v1217_v10 = vld [vmem:[%s1756_s1 + $0xd8] sm:$0xff] }
 0x1a6   : > { %v548_v12 = vmul.f32 1.442695, %v547_v11  ;;  %v1216_v11 = vld [vmem:[%s1756_s1 + $0xd0] sm:$0xff] }
 0x1a8   : > { %1272 = vpow2.f32 %v548_v12  ;;  %v1219_v12 = vld [vmem:[%s1756_s1 + $0xe0] sm:$0xff] }
 0x1ac   : > { %v672_v13 = vpop.xlane.xlu0 %671 }
 0x1ad   : > { %v673_v15 = vsub.f32 %v669_v8, %v672_v13  ;;  %v1221_v8 = vld [vmem:[%s1756_s1 + $0xf0] sm:$0xff]  ;;  %v1215_v13 = vld [vmem:[%s1756_s1 + $0xc8] sm:$0xff] }
 0x1ae   : > { %v1273_v16 = vpop.eup %1272 }
 0x1af   : > { %v674_v17 = vmul.f32 1.442695, %v673_v15  ;;  %v550_v18 = vsel %vm515_vm1, %v1273_v16, 0.0  ;;  %v1214_v15 = vld [vmem:[%s1756_s1 + $0xc0] sm:$0xff] }
 0x1b0   : > { %551 = vadd.xlane.f32.xlu1 %v550_v18 }
 0x1b1   : > { %1274 = vpow2.f32 %v674_v17 }
 0x1b7   : > { %v1275_v19 = vpop.eup %1274 }
 0x1b8   : > { %v676_v20 = vsel %vm515_vm1, %v1275_v19, 0.0 }
 0x1b9   : > { %677 = vadd.xlane.f32.xlu1 %v676_v20 }
 0x223   : > { %v552_v24 = vpop.xlane.xlu1 %551 }
 0x224   : > { %1276 = vrcp.f32 %v552_v24  ;;  %v564_v33 = vand.u32 2147483648, %v552_v24  ;;  %v562_v35 = vand.u32 2147483647, %v552_v24  ;;  %vm558_vm3 = vweird.f32 %v552_v24 }
 0x226   : > { %v565_v38 = vor.u32 1.1754944e-38, %v564_v33  ;;  %vm563_vm5 = vcmp.eq.f32.partialorder %v562_v35, 8.507059e+37 }
 0x22a   : > { %v1277_v29 = vpop.eup %1276 }
 0x22b   : > { %v554_v30 = vmul.f32 %v1277_v29, %v552_v24  ;;  %vm559_vm2 = vweird.f32 %v1277_v29 }
 0x22c   : > { %v678_v31 = vpop.xlane.xlu1 %677  ;;  %vm560_vm4 = vmor %vm558_vm3, %vm559_vm2 }
 0x22d   : > { %1278 = vrcp.f32 %v678_v31  ;;  %v555_v32 = vsub.f32 1.0, %v554_v30  ;;  %v690_v47 = vand.u32 2147483648, %v678_v31  ;;  %v688_v49 = vand.u32 2147483647, %v678_v31 }
 0x22e   : > { %vm684_vm7 = vweird.f32 %v678_v31 }
 0x22f   : > { %v556_v34 = vmul.f32 %v1277_v29, %v555_v32  ;;  %v691_v53 = vor.u32 1.1754944e-38, %v690_v47  ;;  %vm689_vm9 = vcmp.eq.f32.partialorder %v688_v49, 8.507059e+37 }
 0x231   : > { %v557_v36 = vadd.f32 %v1277_v29, %v556_v34 }
 0x233   : > { %v1279_v37 = vpop.eup %1278  ;;  %v561_v39 = vsel %vm560_vm4, %v1277_v29, %v557_v36 }
 0x234   : > { %v680_v40 = vmul.f32 %v1279_v37, %v678_v31  ;;  %v566_v41 = vsel %vm563_vm5, %v565_v38, %v561_v39  ;;  %vm685_vm6 = vweird.f32 %v1279_v37 }
 0x235   : > { %v567_v44 = vmul.f32 %v1273_v16, %v566_v41  ;;  %vm686_vm8 = vmor %vm684_vm7, %vm685_vm6 }
 0x236   : > { %v681_v42 = vsub.f32 1.0, %v680_v40 }
 0x237   : > { %1182 = vmatmul.msk.f32.vlgmr.msra.gmra.mxu1 %vm515_vm1, %v567_v44 }
 0x238   : > { %v682_v48 = vmul.f32 %v1279_v37, %v681_v42  ;;  %807 = vmatpush.msra.mxu1 %v1207_v46 }
 0x23a   : > { %v683_v51 = vadd.f32 %v1279_v37, %v682_v48  ;;  %808 = vmatpush.msra.mxu1 %v1206_v50  ;;  %v1227_v48 = vld [vmem:[%s1759_s4 + $0x18] sm:$0xff] }
 0x23c   : > { %v687_v55 = vsel %vm686_vm8, %v1279_v37, %v683_v51  ;;  %809 = vmatpush.msra.mxu1 %v1205_v52 }
 0x23d   : > { %v692_v57 = vsel %vm689_vm9, %v691_v53, %v687_v55 }
 0x23e   : > { %v693_v58 = vmul.f32 %v1275_v19, %v692_v57  ;;  %810 = vmatpush.msra.mxu1 %v1204_v56 }
 0x240   : > { %1195 = vmatmul.msk.f32.vlgmr.msrb.gmra.mxu1 %vm515_vm1, %v693_v58 }
 0x241   : > { %936 = vmatpush.msrb.mxu1 %v1217_v10 }
 0x243   : > { %937 = vmatpush.msrb.mxu1 %v1216_v11 }
 0x245   : > { %938 = vmatpush.msrb.mxu1 %v1215_v13 }
 0x247   : > { %939 = vmatpush.msrb.mxu1 %v1214_v15 }
 0x248   : > { %1208 = vmatmul.msk.f32.vlgmr.msra.gmra.mxu1 %vm309_vm0, %v1492_v14 }
 0x249   : > { %1064 = vmatpush.msra.mxu1 %v1227_v48 }
 0x250   : > { %1218 = vmatmul.msk.f32.vlgmr.msrb.gmra.mxu1 %vm309_vm0, %v1492_v14 }
 0x2b4   : > { %v588_v59 = vpop.f32.mrf.mxu1 }
 0x2b5   : > { %1198 = vmatmul.msk.f32.vlgmr.msrb.gmra.mxu3 %vm515_vm1, %v588_v59 }
 0x2b6   : > { %1224 = vmatpush.xpose.msk.msrb.mxu3 %vm515_vm1, %v1610_v54 }
 0x2bd   : > { %v714_v60 = vpop.f32.mrf.mxu1 }
 0x2be   : > { %1197 = vmatmul.msk.f32.vlgmr.msrb.gmra.mxu2 %vm515_vm1, %v714_v60 }
 0x2bf   : > { %961 = vmatpush.msrb.mxu2 %v1222_v7 }
 0x2c1   : > { %962 = vmatpush.msrb.mxu2 %v1221_v8 }
 0x2c3   : > { %963 = vmatpush.msrb.mxu2 %v1220_v9 }
 0x2c5   : > { %v812_v63 = vpop.f32.mrf.mxu1  ;;  %964 = vmatpush.msrb.mxu2 %v1219_v12 }
 0x2c6   : > { %v816_v0 = vmul.f32 %v812_v63, %v1604_v45 }
 0x2c8   : > { %v817_v1 = vadd.f32 %v816_v0, %v815_v62 }
 0x2ca   : > { %1210 = vmatmul.msk.f32.vlgmr.msra.gmra.mxu2 %vm515_vm1, %v817_v1 }
 0x2cd   : > { %v941_v31 = vpop.f32.mrf.mxu1 }
 0x2ce   : > { %v969_v34 = vmul.f32 %v941_v31, %v1598_v43 }
 0x2d2   : > { %1223 = vmatmul.msk.f32.vlgmr.msrb.gmra.mxu2 %vm309_vm0, %v1492_v14 }
 0x338   : > { %v762_v37 = vpop.f32.mrf.mxu3 }
 0x341   : > { %v1675_v3 = vpop.f32.mrf.mxu2 }
 0x342   : > { %v763_v63 = vadd.f32 %v762_v37, %v1675_v3 }
 0x34d   : > { %v841_v4 = vpop.f32.mrf.mxu2 }
 0x34e   : > { %v844_v5 = vmul.f32 0.35355338, %v841_v4 }
 0x350   : > { %v845_v6 = vadd.f32 %v844_v5, %v1624_v2 }
 0x352   : > { %v846_v54 = vsel %vm515_vm1, %v845_v6, -inf }
 0x353   : > { %847 = vmax.xlane.f32.xlu2 %v846_v54 }
 0x355   : > { %v966_v32 = vpop.f32.mrf.mxu2 }
 0x356   : > { %v970_v35 = vmul.f32 %v966_v32, %v1604_v45 }
 0x358   : > { %v971_v36 = vadd.f32 %v970_v35, %v969_v34 }
 0x3c6   : > { %v848_v16 = vpop.xlane.xlu2 %847 }
 0x3c7   : > { %v849_v17 = vsub.f32 %v845_v6, %v848_v16 }
 0x3c9   : > { %v850_v18 = vmul.f32 1.442695, %v849_v17 }
 0x3cb   : > { %1280 = vpow2.f32 %v850_v18 }
 0x3d1   : > { %v1281_v19 = vpop.eup %1280 }
 0x3d2   : > { %v852_v20 = vsel %vm515_vm1, %v1281_v19, 0.0 }
 0x3d3   : > { %853 = vadd.xlane.f32.xlu2 %v852_v20 }
 0x446   : > { %v854_v21 = vpop.xlane.xlu2 %853 }
 0x447   : > { %1282 = vrcp.f32 %v854_v21  ;;  %v866_v25 = vand.u32 2147483648, %v854_v21  ;;  %v864_v27 = vand.u32 2147483647, %v854_v21  ;;  %vm860_vm11 = vweird.f32 %v854_v21 }
 0x449   : > { %v867_v14 = vor.u32 1.1754944e-38, %v866_v25  ;;  %vm865_vm13 = vcmp.eq.f32.partialorder %v864_v27, 8.507059e+37 }
 0x44d   : > { %v1283_v22 = vpop.eup %1282 }
 0x44e   : > { %v856_v23 = vmul.f32 %v1283_v22, %v854_v21  ;;  %vm861_vm10 = vweird.f32 %v1283_v22 }
 0x44f   : > { %vm862_vm12 = vmor %vm860_vm11, %vm861_vm10 }
 0x450   : > { %v857_v24 = vsub.f32 1.0, %v856_v23 }
 0x452   : > { %v858_v26 = vmul.f32 %v1283_v22, %v857_v24 }
 0x454   : > { %v859_v28 = vadd.f32 %v1283_v22, %v858_v26 }
 0x456   : > { %v863_v29 = vsel %vm862_vm12, %v1283_v22, %v859_v28 }
 0x457   : > { %v868_v30 = vsel %vm865_vm13, %v867_v14, %v863_v29 }
 0x458   : > { %v869_v33 = vmul.f32 %v1281_v19, %v868_v30 }
 0x45a   : > { %1211 = vmatmul.msk.f32.vlgmr.msra.gmra.mxu3 %vm515_vm1, %v869_v33 }
 0x462   : > { %1225 = vmatmul.msk.f32.vlgmr.msrb.gmra.mxu3 %vm515_vm1, %v971_v36 }
 0x4dd   : > { %v890_v38 = vpop.f32.mrf.mxu3 }
 0x4de   : > { %1213 = vmatmul.msk.f32.vlgmr.msrb.gmra.mxu0 %vm515_vm1, %v890_v38 }
 0x4e5   : > { %v992_v39 = vpop.f32.mrf.mxu3 }
 0x4e6   : > { %v995_v40 = vmul.f32 0.35355338, %v992_v39 }
 0x4e8   : > { %v996_v41 = vadd.f32 %v995_v40, %v1624_v2 }
 0x4ea   : > { %v997_v42 = vsel %vm515_vm1, %v996_v41, -inf }
 0x4eb   : > { %998 = vmax.xlane.f32.xlu0 %v997_v42 }
 0x55b   : > { %v915_v61 = vpop.f32.mrf.mxu0 }
 0x55c   : > { %v918_v0 = vadd.f32 %v915_v61, %v763_v63 }
 0x55e   : > { %v999_v44 = vpop.xlane.xlu0 %998 }
 0x55f   : > { %v1000_v46 = vsub.f32 %v996_v41, %v999_v44 }
 0x561   : > { %v1001_v47 = vmul.f32 1.442695, %v1000_v46 }
 0x563   : > { %1284 = vpow2.f32 %v1001_v47 }
 0x569   : > { %v1285_v43 = vpop.eup %1284 }
 0x56a   : > { %v1003_v45 = vsel %vm515_vm1, %v1285_v43, 0.0 }
 0x56b   : > { %1004 = vadd.xlane.f32.xlu1 %v1003_v45 }
 0x5de   : > { %v1005_v49 = vpop.xlane.xlu1 %1004 }
 0x5df   : > { %1286 = vrcp.f32 %v1005_v49  ;;  %v1017_v52 = vand.u32 2147483648, %v1005_v49  ;;  %v1015_v55 = vand.u32 2147483647, %v1005_v49  ;;  %vm1011_vm15 = vweird.f32 %v1005_v49 }
 0x5e1   : > { %v1018_v57 = vor.u32 1.1754944e-38, %v1017_v52  ;;  %vm1016_vm3 = vcmp.eq.f32.partialorder %v1015_v55, 8.507059e+37 }
 0x5e5   : > { %v1287_v50 = vpop.eup %1286 }
 0x5e6   : > { %v1007_v2 = vmul.f32 %v1287_v50, %v1005_v49  ;;  %vm1012_vm14 = vweird.f32 %v1287_v50 }
 0x5e7   : > { %vm1013_vm2 = vmor %vm1011_vm15, %vm1012_vm14 }
 0x5e8   : > { %v1008_v51 = vsub.f32 1.0, %v1007_v2 }
 0x5ea   : > { %v1009_v53 = vmul.f32 %v1287_v50, %v1008_v51 }
 0x5ec   : > { %v1010_v56 = vadd.f32 %v1287_v50, %v1009_v53 }
 0x5ee   : > { %v1014_v58 = vsel %vm1013_vm2, %v1287_v50, %v1010_v56 }
 0x5ef   : > { %v1019_v59 = vsel %vm1016_vm3, %v1018_v57, %v1014_v58 }
 0x5f0   : > { %v1020_v60 = vmul.f32 %v1285_v43, %v1019_v59 }
 0x5f2   : > { %1226 = vmatmul.msk.f32.vlgmr.msra.gmra.mxu0 %vm515_vm1, %v1020_v60 }
 0x66f   : > { %v1041_v62 = vpop.f32.mrf.mxu0 }
 0x670   : > { %1228 = vmatmul.msk.f32.vlgmr.msra.gmra.mxu1 %vm515_vm1, %v1041_v62 }
 0x6ed   : > { %v1066_v1 = vpop.f32.mrf.mxu1 }
 0x6ee   : > { %v1069_v4 = vadd.f32 %v1066_v1, %v918_v0 }
 0x6f0   : > { %1070 = vst.msk [vmem:[%s296_s20] sm:$0xff] %vm309_vm0, %v1069_v4 }
 0x6f1   : > { %1315 = shalt.err (!%p1312_p3)
}
 0x6f2   : > { %1233 = dma.vmem_to_hbm [thread:$0]  (%p1435_p5), %s1085_s25, 128, %s1087_s26, %s1072_s10  }
 0x6f3 PF: > { %p1239_p4 = scmp.ge.s32.totalorder %s1350_s30, 2  ;;  %s1098_s18 = sand.u32 1, %s1338_s27  }
 0x6f4   : > { %s1099_s23 = scalar_lea.sflag [#allocation3], %s1098_s18 }
 0x6f5   : > { %p1236_p7 = pnand %p1239_p4, %p1439_p6 }
 0x6f7   : > { %p1237_p8 = pneg %p1236_p7 }
 0x6f9   : > { %1333 = dma.done.wait (%p1237_p8), %s1099_s23, 128  }
 0x6fa   : > { %1335 = vsyncadd (%p1237_p8), %s1099_s23, 4294967168  ;;  %p18_p9 = scmp.ge.s32.totalorder %s1422_s11, 4   ;;  %s1766_s27 = smov %s1342_s28 }
 0x6fb   : > { %s1767_s28 = smov %s1346_s29  ;;  %s1768_s29 = smov %s1433_s14 }
 0x6fc   : > { %s1769_s30 = smov %s1422_s11  ;;  %20 = sbr.rel (!%p18_p9) target bundleno = 3 (0x3), region = 101 }
 0x701   :  { %1105 = vsyncpa [#allocation3], 1 }
 0x702   :  { %1107 = vsyncpa [#allocation3 + $0x1], 1 }

</bundles_post_ra>
